<compile_context>
chip_gen: v7x
topology: tpu7x:2x2x1
jax: 0.10.0
libtpu: 0.0.40
codegen_flags: <defaults>
</compile_context>

<pallas_src>
import functools

import jax
import jax.numpy as jnp
from jax.experimental import pallas as pl
from jax.experimental.pallas import tpu as pltpu

LANE = 128
SUBLANE = 8


def _round_up(x, m):
    return ((x + m - 1) // m) * m


# ---------------------------------------------------------------------------
# Kernel: one batch tile, all layers fused (weights stay in VMEM).
# ---------------------------------------------------------------------------
def _mlp_fused_kernel(*refs, num_layers, final_relu_layer):
    """refs = (x_ref, w_0..w_{L-1}, b_0..b_{L-1}, o_ref).

    x_ref : (TM, d_in)              f32
    w_i   : (in_pad_i, out_pad_i)   f32, zero-padded rows/cols
    b_i   : (1, out_pad_i)          f32, zero-padded tail
    o_ref : (TM, out_pad_last)      lane-dense store

    Padded weight rows/cols and bias tails are exact zeros, so padded lanes of
    the activation are exact zeros through every layer (ReLU(0) == 0).
    """
    x_ref = refs[0]
    w_refs = refs[1:1 + num_layers]
    b_refs = refs[1 + num_layers:1 + 2 * num_layers]
    o_ref = refs[1 + 2 * num_layers]

    h = x_ref[...]                                     # (TM, d_in)
    for i in range(num_layers):                        # static, unrolled
        if i < final_relu_layer:
            h = jnp.maximum(h, 0.0)                    # ReLU before Linear i
        h = jnp.dot(h, w_refs[i][...],
                    preferred_element_type=jnp.float32) + b_refs[i][...]
    o_ref[...] = h.astype(o_ref.dtype)                 # lane-dense (TM, out_pad)


# ---------------------------------------------------------------------------
# One-time parameter preparation (hoisted out of the per-forward hot path).
# ---------------------------------------------------------------------------
def init_mlp_params(key, layer_sizes):
    """Deterministic params mimicking nn.Linear shapes (weight: (out, in))."""
    params = []
    for i in range(len(layer_sizes) - 1):
        in_f, out_f = int(layer_sizes[i]), int(layer_sizes[i + 1])
        key, kw, kb = jax.random.split(key, 3)
        bound = 1.0 / (in_f ** 0.5)
        w = jax.random.uniform(kw, (out_f, in_f), jnp.float32, -bound, bound)
        b = jax.random.uniform(kb, (out_f,), jnp.float32, -bound, bound)
        params.append((w, b))
    return params


def prepare_params(params, layer_sizes):
    """Transpose each weight to (in, out) and zero-pad per layer:
       layer i weight -> (in_pad_i, out_pad_i), bias -> (1, out_pad_i)
       with out_pad_i = round_up(out_i, 128) and in_pad_i = out_pad_{i-1}
       (in_pad_0 = raw d_in, since x is passed unpadded).  Done once."""
    dims = [int(d) for d in layer_sizes]
    num_layers = len(dims) - 1
    w_pads, b_pads = [], []
    for i, (w, b) in enumerate(params):
        out_f, in_f = w.shape
        in_pad = dims[0] if i == 0 else _round_up(dims[i], LANE)
        out_pad = _round_up(out_f, LANE)
        wp = jnp.zeros((in_pad, out_pad), jnp.float32)
        wp = wp.at[:in_f, :out_f].set(jnp.transpose(w))
        bp = jnp.zeros((1, out_pad), jnp.float32).at[0, :out_f].set(b)
        w_pads.append(wp)
        b_pads.append(bp)
    return tuple(w_pads), tuple(b_pads)


# ---------------------------------------------------------------------------
# Fused forward pass (single pallas_call).
# ---------------------------------------------------------------------------
@functools.partial(jax.jit, static_argnames=("layer_sizes", "final_relu"))
def mlp_forward(x, w_pads, b_pads, layer_sizes, final_relu=False):
    dims = tuple(int(d) for d in layer_sizes)
    num_layers = len(dims) - 1
    final_relu_layer = num_layers if final_relu else num_layers - 1

    M, d_in = x.shape
    out_pad_last = w_pads[-1].shape[-1]

    # Batch tiling: one tile at tiny batch; tiles of up to 256 rows otherwise,
    # with the batch axis marked "parallel" (megacore sharding on v7x).
    TM = max(SUBLANE, min(256, _round_up(M, SUBLANE)))
    M_pad = _round_up(M, TM)
    x_p = x if M_pad == M else jnp.pad(x, ((0, M_pad - M), (0, 0)))

    kernel = functools.partial(
        _mlp_fused_kernel, num_layers=num_layers,
        final_relu_layer=final_relu_layer)

    # Weights/biases: full-array blocks with constant index_map -> fetched
    # once, VMEM-resident across batch-tile grid steps.
    w_specs = [pl.BlockSpec(w.shape, lambda m: (0, 0)) for w in w_pads]
    b_specs = [pl.BlockSpec(b.shape, lambda m: (0, 0)) for b in b_pads]

    y_pad = pl.pallas_call(
        kernel,
        out_shape=jax.ShapeDtypeStruct((M_pad, out_pad_last), x.dtype),
        grid=(M_pad // TM,),
        in_specs=[pl.BlockSpec((TM, d_in), lambda m: (m, 0))] + w_specs + b_specs,
        out_specs=pl.BlockSpec((TM, out_pad_last), lambda m: (m, 0)),
        compiler_params=pltpu.CompilerParams(
            dimension_semantics=("parallel",)),
    )(x_p, *w_pads, *b_pads)

    # Un-pad: drop padded batch rows and padded output lanes.
    return y_pad[:M, :dims[-1]]


# ---------------------------------------------------------------------------
# Pure-JAX reference (mirrors PyTorch MLP.forward exactly).
# ---------------------------------------------------------------------------
def mlp_reference(x, params, final_relu=False):
    num_layers = len(params)
    final_relu_layer = num_layers if final_relu else num_layers - 1
    h = x
    for i, (w, b) in enumerate(params):
        if i < final_relu_layer:
            h = jnp.maximum(h, 0.0)
        h = h @ w.T + b
    return h


if __name__ == "__main__":
    layer_sizes = (32, 64, 16)   # MLP([32, 64, 16], final_relu=False)
    batch = 8

    key = jax.random.PRNGKey(0)
    key, kx = jax.random.split(key)
    x = jax.random.normal(kx, (batch, layer_sizes[0]), jnp.float32)

    params = init_mlp_params(key, layer_sizes)
    w_pads, b_pads = prepare_params(params, layer_sizes)   # one-time prep

    y = mlp_forward(x, w_pads, b_pads, layer_sizes, final_relu=False)
    y = jax.block_until_ready(y)
    y_ref = mlp_reference(x, params, final_relu=False)
    assert y.shape == (batch, layer_sizes[-1])
    assert jnp.allclose(y, y_ref, atol=1e-4, rtol=1e-5), "mismatch (final_relu=False)"

    # Also exercise the final_relu=True wiring (ReLU before the last Linear too).
    y2 = jax.block_until_ready(
        mlp_forward(x, w_pads, b_pads, layer_sizes, final_relu=True))
    y2_ref = mlp_reference(x, params, final_relu=True)
    assert jnp.allclose(y2, y2_ref, atol=1e-4, rtol=1e-5), "mismatch (final_relu=True)"

    print("KERNEL_OK")
</pallas_src>

<mosaic_0001>
module attributes {stable_mosaic.version = 11 : i64} {
  func.func @_mlp_fused_kernel(%arg0: i32, %arg1: memref<8x32xf32, #tpu.memory_space<vmem>>, %arg2: memref<32x128xf32, #tpu.memory_space<vmem>>, %arg3: memref<128x128xf32, #tpu.memory_space<vmem>>, %arg4: memref<1x128xf32, #tpu.memory_space<vmem>>, %arg5: memref<1x128xf32, #tpu.memory_space<vmem>>, %arg6: memref<8x128xf32, #tpu.memory_space<vmem>>) attributes {dimension_semantics = [#tpu.dimension_semantics<parallel>], iteration_bounds = array<i64: 1>, scalar_prefetch = 0 : i64, scratch_operands = 0 : i64, tpu.core_type = #tpu.core_type<tc>, window_params = [{transform_indices = @transform_0, window_bounds = array<i64: 8, 32>}, {pipeline_mode = #tpu.pipeline_mode<synchronous>, transform_indices = @transform_1, window_bounds = array<i64: 32, 128>}, {pipeline_mode = #tpu.pipeline_mode<synchronous>, transform_indices = @transform_2, window_bounds = array<i64: 128, 128>}, {pipeline_mode = #tpu.pipeline_mode<synchronous>, transform_indices = @transform_3, window_bounds = array<i64: 1, 128>}, {pipeline_mode = #tpu.pipeline_mode<synchronous>, transform_indices = @transform_4, window_bounds = array<i64: 1, 128>}, {transform_indices = @transform_5, window_bounds = array<i64: 8, 128>}]} {
    %c0 = arith.constant 0 : index
    %c0_0 = arith.constant 0 : index
    %0 = vector.load %arg1[%c0, %c0_0] : memref<8x32xf32, #tpu.memory_space<vmem>>, vector<8x32xf32>
    %cst = arith.constant 0.000000e+00 : f32
    %1 = vector.broadcast %cst : f32 to vector<8x32xf32>
    %2 = arith.maximumf %0, %1 : vector<8x32xf32>
    %c0_1 = arith.constant 0 : index
    %c0_2 = arith.constant 0 : index
    %3 = vector.load %arg2[%c0_1, %c0_2] : memref<32x128xf32, #tpu.memory_space<vmem>>, vector<32x128xf32>
    %cst_3 = arith.constant dense<0.000000e+00> : vector<8x128xf32>
    %4 = tpu.matmul %2, %3, %cst_3 {dimension_numbers = #tpu.dot_dimension_numbers<[1], [0], [0], [1], [0, 0, 1, 1], [], []>} : vector<8x32xf32>, vector<32x128xf32>, vector<8x128xf32> -> vector<8x128xf32>
    %c0_4 = arith.constant 0 : index
    %c0_5 = arith.constant 0 : index
    %5 = vector.load %arg4[%c0_4, %c0_5] : memref<1x128xf32, #tpu.memory_space<vmem>>, vector<1x128xf32>
    %6 = vector.broadcast %5 : vector<1x128xf32> to vector<8x128xf32>
    %7 = arith.addf %4, %6 : vector<8x128xf32>
    %c0_6 = arith.constant 0 : index
    %c0_7 = arith.constant 0 : index
    %8 = vector.load %arg3[%c0_6, %c0_7] : memref<128x128xf32, #tpu.memory_space<vmem>>, vector<128x128xf32>
    %cst_8 = arith.constant dense<0.000000e+00> : vector<8x128xf32>
    %9 = tpu.matmul %7, %8, %cst_8 {dimension_numbers = #tpu.dot_dimension_numbers<[1], [0], [0], [1], [0, 0, 1, 1], [], []>} : vector<8x128xf32>, vector<128x128xf32>, vector<8x128xf32> -> vector<8x128xf32>
    %c0_9 = arith.constant 0 : index
    %c0_10 = arith.constant 0 : index
    %10 = vector.load %arg5[%c0_9, %c0_10] : memref<1x128xf32, #tpu.memory_space<vmem>>, vector<1x128xf32>
    %11 = vector.broadcast %10 : vector<1x128xf32> to vector<8x128xf32>
    %12 = arith.addf %9, %11 : vector<8x128xf32>
    %c0_11 = arith.constant 0 : index
    %c0_12 = arith.constant 0 : index
    %13 = vector.load %arg6[%c0_11, %c0_12] : memref<8x128xf32, #tpu.memory_space<vmem>>, vector<8x128xf32>
    tpu.vector_store %arg6[%c0_11, %c0_12], %12 {strides = array<i32>} : memref<8x128xf32, #tpu.memory_space<vmem>>, vector<8x128xf32>,
    return
  }
  func.func @transform_0(%arg0: i32) -> (i32, i32) {
    %c0_i32 = arith.constant 0 : i32
    %c0_i32_0 = arith.constant 0 : i32
    return %arg0, %c0_i32 : i32, i32
  }
  func.func @transform_1(%arg0: i32) -> (i32, i32) {
    %c0_i32 = arith.constant 0 : i32
    %c0_i32_0 = arith.constant 0 : i32
    %c0_i32_1 = arith.constant 0 : i32
    return %c0_i32, %c0_i32_0 : i32, i32
  }
  func.func @transform_2(%arg0: i32) -> (i32, i32) {
    %c0_i32 = arith.constant 0 : i32
    %c0_i32_0 = arith.constant 0 : i32
    %c0_i32_1 = arith.constant 0 : i32
    return %c0_i32, %c0_i32_0 : i32, i32
  }
  func.func @transform_3(%arg0: i32) -> (i32, i32) {
    %c0_i32 = arith.constant 0 : i32
    %c0_i32_0 = arith.constant 0 : i32
    %c0_i32_1 = arith.constant 0 : i32
    return %c0_i32, %c0_i32_0 : i32, i32
  }
  func.func @transform_4(%arg0: i32) -> (i32, i32) {
    %c0_i32 = arith.constant 0 : i32
    %c0_i32_0 = arith.constant 0 : i32
    %c0_i32_1 = arith.constant 0 : i32
    return %c0_i32, %c0_i32_0 : i32, i32
  }
  func.func @transform_5(%arg0: i32) -> (i32, i32) {
    %c0_i32 = arith.constant 0 : i32
    %c0_i32_0 = arith.constant 0 : i32
    return %arg0, %c0_i32 : i32, i32
  }
}

</mosaic_0001>

<bundles_post_ra>
// kernel: mlp_forward.1
= control target key start
LH: loop header
LB: loop body
LE: loop exit
PB: predicated region body
PF: predicated region fallthrough
CT: control target
= control target key end

     0   :  { %10 = vsyncpa [#allocation3], 0  ;;  %s560_s0 = inlined_call_operand.hbm [shape: f32[8,32], index: 0, kind: input, shape index: {}]   ;;  %s561_s1 = inlined_call_operand.hbm [shape: f32[32,128], index: 1, kind: input, shape index: {}]   ;;  %s562_s2 = inlined_call_operand.hbm [shape: f32[128,128], index: 2, kind: input, shape index: {}]   ;;  %s563_s3 = inlined_call_operand.vmem [shape: f32[1,128], index: 3, kind: input, shape index: {}]   ;;  %s564_s4 = inlined_call_operand.vmem [shape: f32[1,128], index: 4, kind: input, shape index: {}]   ;;  %s565_s5 = inlined_call_operand.hbm [shape: f32[8,128], index: 5, kind: output, shape index: {}]  }
   0x1   :  { %11 = vsyncpa [#allocation6], 0 }
   0x2   :  { %12 = vsyncpa [#allocation4], 0  ;;  %s461_s18 = smov [#allocation5]   ;;  %s367_s22 = scalar_lea.hbm %s561_s1, 512 }
   0x3   :  { %s28_s19 = sshll.u32 %s461_s18, 4  ;;  %p368_p0 = scmp.ne.s32.totalorder %s561_s1, %s367_s22  ;;  %s29_s19 = int_to_ptr.vmem [resolvable:$true] %s28_s19 }
   0x4   :  { %p371_p1 = scmp.lt.u32.totalorder %s367_s22, %s561_s1 }
   0x6   :  { %p373_p2 = pnand %p371_p1, %p368_p0 }
   0x8   :  { %376 = shalt.err (!%p373_p2)
}
   0x9   :  { %s377_s27 = scalar_lea.vmem %s29_s19, 512  ;;  %p382_p4 = scmp.lt.s32.totalorder %s29_s19, %s29_s19 }
   0xa   :  { %p378_p3 = scmp.ne.s32.totalorder %s29_s19, %s377_s27  ;;  %p383_p5 = scmp.lt.s32.totalorder %s377_s27, %s377_s27 }
   0xc   :  { %p384_p6 = por %p383_p5, %p382_p4 }
   0xe   :  { %p385_p7 = pnand %p384_p6, %p378_p3 }
  0x10   :  { %388 = shalt.err (!%p385_p7)
}
  0x11   :  { %s462_s28 = smov 128   ;;  %s463_s29 = smov 8  }
  0x12   :  { %34 = dma.hbm_to_vmem [thread:$0]  %s561_s1, 512, %s29_s19, [#allocation6], %s462_s28, %s462_s28, %s463_s29  }
  0x13   :  { %s464_s7 = smov [#allocation2]   ;;  %s465_s9 = smov [#allocation7]  }
  0x14   :  { %s19_s8 = sshll.u32 %s464_s7, 4  ;;  %s40_s10 = sshll.u32 %s465_s9, 4  ;;  %s20_s8 = int_to_ptr.vmem [resolvable:$true] %s19_s8  ;;  %s41_s10 = int_to_ptr.vmem [resolvable:$true] %s40_s10 }
  0x15   :  { %s389_s13 = scalar_lea.hbm %s560_s0, 128 }
  0x16   :  { %p390_p8 = scmp.ne.s32.totalorder %s560_s0, %s389_s13  ;;  %p393_p9 = scmp.lt.u32.totalorder %s389_s13, %s560_s0 }
  0x18   :  { %p395_p10 = pnand %p393_p9, %p390_p8 }
  0x1a   :  { %398 = shalt.err (!%p395_p10)
}
  0x1b   :  { %s399_s1 = scalar_lea.vmem %s20_s8, 128  ;;  %p404_p12 = scmp.lt.s32.totalorder %s20_s8, %s20_s8 }
  0x1c   :  { %p400_p11 = scmp.ne.s32.totalorder %s20_s8, %s399_s1  ;;  %p405_p13 = scmp.lt.s32.totalorder %s399_s1, %s399_s1 }
  0x1e   :  { %p406_p0 = por %p405_p13, %p404_p12 }
  0x20   :  { %p407_p1 = pnand %p406_p0, %p400_p11 }
  0x22   :  { %410 = shalt.err (!%p407_p1)
}
  0x23   :  { %22 = dma.hbm_to_vmem [thread:$0]  %s560_s0, 128, %s20_s8, [#allocation3]  }
  0x24   :  { %s411_s22 = scalar_lea.hbm %s562_s2, 2048 }
  0x25   :  { %p412_p2 = scmp.ne.s32.totalorder %s562_s2, %s411_s22  ;;  %p415_p3 = scmp.lt.u32.totalorder %s411_s22, %s562_s2 }
  0x27   :  { %p417_p4 = pnand %p415_p3, %p412_p2 }
  0x29   :  { %420 = shalt.err (!%p417_p4)
}
  0x2a   :  { %s421_s27 = scalar_lea.vmem %s41_s10, 2048  ;;  %p426_p6 = scmp.lt.s32.totalorder %s41_s10, %s41_s10 }
  0x2b   :  { %p422_p5 = scmp.ne.s32.totalorder %s41_s10, %s421_s27  ;;  %p427_p7 = scmp.lt.s32.totalorder %s421_s27, %s421_s27 }
  0x2d   :  { %p428_p8 = por %p427_p7, %p426_p6 }
  0x2f   :  { %p429_p9 = pnand %p428_p8, %p422_p5 }
  0x31   :  { %432 = shalt.err (!%p429_p9)
}
  0x32   :  { %46 = dma.hbm_to_vmem [thread:$0]  %s562_s2, 2048, %s41_s10, [#allocation6], %s462_s28, %s462_s28, %s463_s29  }
  0x33   :  { %455 = dma.done.wait [#allocation3], 128  }
  0x34   :  { %456 = vsyncadd [#allocation3], 4294967168 }
  0x35   :  { %457 = dma.done.wait [#allocation6], 2560  }
  0x36   :  { %458 = vsyncadd [#allocation6], 4294964736  ;;  %v466_v0 = vmov 0.0|0.0   ;;  %vm467_vm0 = vmmov 0   ;;  %v468_v1 = vmov 0.0   ;;  %v62_v2 = vld [vmem:[#allocation5] sm:$0xff] }
  0x37   :  { %328 = vmatprep.subr.bf16.mxu0 %v466_v0  ;;  %290 = vmatprep.mubr.msk.f32.mxu0 %vm467_vm0, %v468_v1  ;;  %v63_v3 = vld [vmem:[#allocation5 + $0x8] sm:$0xff]  ;;  %v64_v4 = vld [vmem:[#allocation5 + $0x10] sm:$0xff]  ;;  %v65_v6 = vld [vmem:[#allocation5 + $0x18] sm:$0xff]  ;;  %vm73_vm1 = vcmask 261120   ;;  %s469_s7 = smov [#allocation8]  }
  0x38   :  { %334 = vmatprep.subr.bf16.mxu1 %v466_v0  ;;  %325 = vmatprep.mubr.msk.f32.mxu1 %vm467_vm0, %v468_v1  ;;  %v329_v5 = vpack.c.bf16 %v63_v3, %v62_v2  ;;  %v147_v7 = vld [vmem:[#allocation7] sm:$0xff]  ;;  %v148_v8 = vld [vmem:[#allocation7 + $0x8] sm:$0xff]  ;;  %v149_v9 = vld [vmem:[#allocation7 + $0x10] sm:$0xff]  ;;  %v332_v11 = vpack.c.bf16 %v65_v6, %v64_v4  ;;  %s247_s8 = sshll.u32 %s469_s7, 4  ;;  %s248_s8 = int_to_ptr.vmem [resolvable:$true] %s247_s8 }
  0x39   :  { %v150_v10 = vld [vmem:[#allocation7 + $0x18] sm:$0xff]  ;;  %v335_v13 = vpack.c.bf16 %v148_v8, %v147_v7  ;;  %v151_v16 = vld [vmem:[#allocation7 + $0x20] sm:$0xff]  ;;  %v152_v17 = vld [vmem:[#allocation7 + $0x28] sm:$0xff]  ;;  %s433_s9 = scalar_lea.vmem %s248_s8, 128  ;;  %p438_p11 = scmp.lt.s32.totalorder %s248_s8, %s248_s8 }
  0x3a   :  { %330 = vmatpush3.bf16.msra.mxu0 %v329_v5  ;;  %v60_v12 = vld [vmem:[#allocation2] sm:$0xff]  ;;  %v338_v14 = vpack.c.bf16 %v150_v10, %v149_v9  ;;  %v341_v18 = vpack.c.bf16 %v152_v17, %v151_v16  ;;  %v153_v19 = vld [vmem:[#allocation7 + $0x30] sm:$0xff]  ;;  %v155_v22 = vld [vmem:[#allocation7 + $0x40] sm:$0xff]  ;;  %p434_p10 = scmp.ne.s32.totalorder %s248_s8, %s433_s9  ;;  %p439_p12 = scmp.lt.s32.totalorder %s433_s9, %s433_s9 }
  0x3b   :  { %331 = vmatprep.subr.bf16.mxu0 %v466_v0  ;;  %336 = vmatpush3.bf16.msra.mxu1 %v335_v13  ;;  %v61_v15 = vmax.f32 %v60_v12, 0.0  ;;  %v154_v20 = vld [vmem:[#allocation7 + $0x38] sm:$0xff]  ;;  %v156_v23 = vld [vmem:[#allocation7 + $0x48] sm:$0xff]  ;;  %v157_v25 = vld [vmem:[#allocation7 + $0x50] sm:$0xff] }
  0x3c   :  { %337 = vmatprep.subr.bf16.mxu1 %v466_v0  ;;  %v344_v21 = vpack.c.bf16 %v154_v20, %v153_v19  ;;  %v347_v24 = vpack.c.bf16 %v156_v23, %v155_v22  ;;  %v158_v26 = vld [vmem:[#allocation7 + $0x58] sm:$0xff]  ;;  %v159_v28 = vld [vmem:[#allocation7 + $0x60] sm:$0xff]  ;;  %v160_v29 = vld [vmem:[#allocation7 + $0x68] sm:$0xff]  ;;  %p440_p13 = por %p439_p12, %p438_p11 }
  0x3d   :  { %v350_v27 = vpack.c.bf16 %v158_v26, %v157_v25  ;;  %v353_v30 = vpack.c.bf16 %v160_v29, %v159_v28  ;;  %v161_v31 = vld [vmem:[#allocation7 + $0x70] sm:$0xff]  ;;  %v162_v32 = vld [vmem:[#allocation7 + $0x78] sm:$0xff] }
  0x3e   :  { %333 = vmatpush3.bf16.msra.mxu0 %v332_v11  ;;  %v356_v33 = vpack.c.bf16 %v162_v32, %v161_v31  ;;  %v257_v34 = vld [vmem:[%s563_s3] ss:$0 sm:$0xff]  ;;  %p441_p0 = pnand %p440_p13, %p434_p10 }
  0x3f   :  { %339 = vmatpush3.bf16.msra.mxu1 %v338_v14  ;;  %v259_v38 = vld [vmem:[%s564_s4] ss:$0 sm:$0xff] }
  0x40   :  { %340 = vmatprep.subr.bf16.mxu1 %v466_v0 }
  0x41   :  { %291 = vmatmul.mubr.msk.f32.vlgmr.msra.gmra.mrb[0].mxu0 %vm73_vm1, %v61_v15 }
  0x43   :  { %342 = vmatpush3.bf16.msra.mxu1 %v341_v18 }
  0x44   :  { %343 = vmatprep.subr.bf16.mxu1 %v466_v0 }
  0x47   :  { %345 = vmatpush3.bf16.msra.mxu1 %v344_v21 }
  0x48   :  { %346 = vmatprep.subr.bf16.mxu1 %v466_v0 }
  0x4b   :  { %348 = vmatpush3.bf16.msra.mxu1 %v347_v24 }
  0x4c   :  { %349 = vmatprep.subr.bf16.mxu1 %v466_v0 }
  0x4f   :  { %351 = vmatpush3.bf16.msra.mxu1 %v350_v27 }
  0x50   :  { %352 = vmatprep.subr.bf16.mxu1 %v466_v0 }
  0x53   :  { %354 = vmatpush3.bf16.msra.mxu1 %v353_v30 }
  0x54   :  { %355 = vmatprep.subr.bf16.mxu1 %v466_v0 }
  0x57   :  { %357 = vmatpush3.bf16.msra.mxu1 %v356_v33 }
 0x114   :  { %v143_v35 = vpop.f32.mrb[0].mxu0 }
 0x115   :  { %v144_v36 = vadd.f32 %v257_v34, %v143_v35  ;;  %v292_v37 = vpop.f32.mrb[1].mxu0 }
 0x117   :  { %326 = vmatmul.mubr.f32.vlgmr.msra.gmra.mrb[0].mxu1 %v144_v36 }
 0x1ea   :  { %v236_v39 = vpop.f32.mrb[0].mxu1 }
 0x1eb   :  { %v237_v40 = vadd.f32 %v259_v38, %v236_v39  ;;  %v327_v41 = vpop.f32.mrb[1].mxu1 }
 0x1ed   :  { %240 = vst [vmem:[#allocation8] sm:$0xff] %v237_v40 }
 0x1ee   :  { %444 = shalt.err (!%p441_p0)
}
 0x1ef   :  { %s445_s11 = scalar_lea.hbm %s565_s5, 128 }
 0x1f0   :  { %p446_p1 = scmp.ne.s32.totalorder %s565_s5, %s445_s11  ;;  %p449_p2 = scmp.lt.u32.totalorder %s445_s11, %s565_s5 }
 0x1f2   :  { %p451_p3 = pnand %p449_p2, %p446_p1 }
 0x1f4   :  { %454 = shalt.err (!%p451_p3)
}
 0x1f5   :  { %250 = dma.vmem_to_hbm [thread:$0]  %s248_s8, 128, %s565_s5, [#allocation4]  }
 0x1f6   :  { %459 = dma.done.wait [#allocation4], 128  }
 0x1f7   :  { %460 = vsyncadd [#allocation4], 4294967168 }
 0x1f8   :  { %254 = vsyncpa [#allocation3], 1 }
 0x1f9   :  { %255 = vsyncpa [#allocation6], 1 }
 0x1fa   :  { %256 = vsyncpa [#allocation4], 1 }

</bundles_post_ra>
